<compile_context>
chip_gen: v7x
topology: tpu7x:2x2x1
jax: 0.10.0
libtpu: 0.0.40
codegen_flags: <defaults>
</compile_context>

<pallas_src>
import jax
import jax.numpy as jnp
from jax.experimental import pallas as pl
from jax.experimental.pallas import tpu as pltpu

_LANE = 128     # lane width (last dim)
_SUBLANE = 8    # f32 sublane (second-to-last dim)


def _round_up(n, m):
    return ((n + m - 1) // m) * m


def fc_kernel(x_ref,
              w1_ref, b1_ref,
              w2_ref, b2_ref,
              w3_ref, b3_ref,
              w4_ref, b4_ref,
              o_ref):
    """One batch tile of the 4-layer MLP. Weights/biases are VMEM-resident."""
    cdt = w1_ref.dtype  # bf16 matmul operands, f32 accumulation
    # Layer 1: Linear(input, hidden//2) + ReLU   (eval-mode dropout == identity)
    h = jnp.dot(x_ref[...].astype(cdt), w1_ref[...],
                preferred_element_type=jnp.float32)
    h = jnp.maximum(h + b1_ref[...], 0.0)
    # Layer 2: Linear(hidden//2, hidden//2) + ReLU
    h = jnp.dot(h.astype(cdt), w2_ref[...], preferred_element_type=jnp.float32)
    h = jnp.maximum(h + b2_ref[...], 0.0)
    # Layer 3: Linear(hidden//2, hidden) + ReLU
    h = jnp.dot(h.astype(cdt), w3_ref[...], preferred_element_type=jnp.float32)
    h = jnp.maximum(h + b3_ref[...], 0.0)
    # Layer 4: Linear(hidden, output)  (no activation)
    out = jnp.dot(h.astype(cdt), w4_ref[...],
                  preferred_element_type=jnp.float32) + b4_ref[...]
    o_ref[...] = out.astype(o_ref.dtype)


def fc_forward(x, params, *, compute_dtype=jnp.bfloat16, batch_tile=512):
    """x: [B, input_size] f32.  params: list of (w, b), w: [in, out], b: [1, out]."""
    (w1, b1), (w2, b2), (w3, b3), (w4, b4) = params
    B, in_size = x.shape
    out_size = w4.shape[1]

    # ---- pad every feature dim to a multiple of 128 lanes (zero fill) -------
    dims = [in_size, w1.shape[1], w2.shape[1], w3.shape[1], out_size]
    pdims = [_round_up(d, _LANE) for d in dims]

    def pad_w(w, din, dout):
        return (jnp.zeros((din, dout), compute_dtype)
                .at[:w.shape[0], :w.shape[1]].set(w.astype(compute_dtype)))

    def pad_b(b, dout):
        return (jnp.zeros((1, dout), jnp.float32)
                .at[:, :b.shape[1]].set(b.astype(jnp.float32)))

    ws = [pad_w(w, pdims[i], pdims[i + 1]) for i, (w, _) in enumerate(params)]
    bs = [pad_b(b, pdims[i + 1]) for i, (_, b) in enumerate(params)]

    # ---- batch tiling --------------------------------------------------------
    tb = min(batch_tile, _round_up(B, _SUBLANE))
    b_pad = _round_up(B, tb)
    x_p = jnp.zeros((b_pad, pdims[0]), x.dtype).at[:B, :in_size].set(x)
    grid = (b_pad // tb,)

    def resident(shape):
        # Constant block index -> fetched once, stays in VMEM across the grid.
        return pl.BlockSpec(shape, lambda i: tuple(0 for _ in shape))

    in_specs = [pl.BlockSpec((tb, pdims[0]), lambda i: (i, 0))]
    for w, b in zip(ws, bs):
        in_specs += [resident(w.shape), resident(b.shape)]

    # ---- cost estimate + VMEM budget ----------------------------------------
    flops = 2 * b_pad * sum(pdims[i] * pdims[i + 1] for i in range(4))
    bytes_accessed = (x_p.size * x_p.dtype.itemsize
                      + sum(a.size * a.dtype.itemsize for a in ws + bs)
                      + b_pad * pdims[-1] * x.dtype.itemsize)

    weight_bytes = sum(a.size * a.dtype.itemsize for a in ws + bs)
    tile_io_bytes = 2 * tb * (pdims[0] + pdims[-1]) * x.dtype.itemsize  # dbl-buffered
    act_bytes = 3 * tb * max(pdims[1:]) * 4                             # f32 intermediates
    vmem_limit = int(min(max(2 * (weight_bytes + tile_io_bytes + act_bytes),
                             32 << 20), 64 << 20))

    out_p = pl.pallas_call(
        fc_kernel,
        out_shape=jax.ShapeDtypeStruct((b_pad, pdims[-1]), x.dtype),
        grid=grid,
        in_specs=in_specs,
        out_specs=pl.BlockSpec((tb, pdims[-1]), lambda i: (i, 0)),
        compiler_params=pltpu.CompilerParams(
            dimension_semantics=("parallel",),
            vmem_limit_bytes=vmem_limit),
        cost_estimate=pl.CostEstimate(flops=flops, transcendentals=0,
                                      bytes_accessed=bytes_accessed),
    )(x_p, ws[0], bs[0], ws[1], bs[1], ws[2], bs[2], ws[3], bs[3])

    # Slice back to the logical batch / output width.
    return out_p[:B, :out_size]


def init_params(key, input_size, hidden_size, output_size):
    """Deterministic init mimicking nn.Linear's U(-1/sqrt(fan_in), 1/sqrt(fan_in))."""
    dims = [
        (input_size, hidden_size // 2),
        (hidden_size // 2, hidden_size // 2),
        (hidden_size // 2, hidden_size),
        (hidden_size, output_size),
    ]
    params = []
    for (fan_in, fan_out) in dims:
        key, kw, kb = jax.random.split(key, 3)
        bound = 1.0 / jnp.sqrt(jnp.float32(fan_in))
        w = jax.random.uniform(kw, (fan_in, fan_out), jnp.float32, -bound, bound)
        b = jax.random.uniform(kb, (1, fan_out), jnp.float32, -bound, bound)
        params.append((w, b))
    return params


def reference(x, params, compute_dtype=jnp.bfloat16):
    """Pure-JAX reference matching the kernel's bf16-matmul / f32-accumulate math."""
    h = x
    for i, (w, b) in enumerate(params):
        h = jnp.dot(h.astype(compute_dtype), w.astype(compute_dtype),
                    preferred_element_type=jnp.float32) + b
        if i < len(params) - 1:
            h = jnp.maximum(h, 0.0)   # eval-mode dropout == identity
    return h


if __name__ == "__main__":
    input_size = 32
    hidden_size = 32
    output_size = 8

    key = jax.random.PRNGKey(0)
    key, kx = jax.random.split(key)
    params = init_params(key, input_size, hidden_size, output_size)

    # Small, uneven batch (exercises pad-and-slice on both batch and lanes).
    batch = 10
    x = jax.random.normal(kx, (batch, input_size), jnp.float32)
    out = jax.block_until_ready(fc_forward(x, params))
    ref = reference(x, params)
    assert out.shape == (batch, output_size)
    assert jnp.allclose(out, ref, atol=2e-3, rtol=2e-3)

    # Multi-tile grid check (batch_tile forced small so grid has >1 step).
    key, kx2 = jax.random.split(key)
    x2 = jax.random.normal(kx2, (40, input_size), jnp.float32)
    out2 = jax.block_until_ready(fc_forward(x2, params, batch_tile=16))
    ref2 = reference(x2, params)
    assert out2.shape == (40, output_size)
    assert jnp.allclose(out2, ref2, atol=2e-3, rtol=2e-3)

    print("KERNEL_OK")
</pallas_src>

<mosaic_0001>
module attributes {stable_mosaic.version = 11 : i64} {
  func.func @fc_kernel(%arg0: i32, %arg1: memref<16x128xf32, #tpu.memory_space<vmem>>, %arg2: memref<128x128xbf16, #tpu.memory_space<vmem>>, %arg3: memref<1x128xf32, #tpu.memory_space<vmem>>, %arg4: memref<128x128xbf16, #tpu.memory_space<vmem>>, %arg5: memref<1x128xf32, #tpu.memory_space<vmem>>, %arg6: memref<128x128xbf16, #tpu.memory_space<vmem>>, %arg7: memref<1x128xf32, #tpu.memory_space<vmem>>, %arg8: memref<128x128xbf16, #tpu.memory_space<vmem>>, %arg9: memref<1x128xf32, #tpu.memory_space<vmem>>, %arg10: memref<16x128xf32, #tpu.memory_space<vmem>>) attributes {dimension_semantics = [#tpu.dimension_semantics<parallel>], iteration_bounds = array<i64: 1>, scalar_prefetch = 0 : i64, scratch_operands = 0 : i64, tpu.core_type = #tpu.core_type<tc>, window_params = [{transform_indices = @transform_0, window_bounds = array<i64: 16, 128>}, {pipeline_mode = #tpu.pipeline_mode<synchronous>, transform_indices = @transform_1, window_bounds = array<i64: 128, 128>}, {pipeline_mode = #tpu.pipeline_mode<synchronous>, transform_indices = @transform_2, window_bounds = array<i64: 1, 128>}, {pipeline_mode = #tpu.pipeline_mode<synchronous>, transform_indices = @transform_3, window_bounds = array<i64: 128, 128>}, {pipeline_mode = #tpu.pipeline_mode<synchronous>, transform_indices = @transform_4, window_bounds = array<i64: 1, 128>}, {pipeline_mode = #tpu.pipeline_mode<synchronous>, transform_indices = @transform_5, window_bounds = array<i64: 128, 128>}, {pipeline_mode = #tpu.pipeline_mode<synchronous>, transform_indices = @transform_6, window_bounds = array<i64: 1, 128>}, {pipeline_mode = #tpu.pipeline_mode<synchronous>, transform_indices = @transform_7, window_bounds = array<i64: 128, 128>}, {pipeline_mode = #tpu.pipeline_mode<synchronous>, transform_indices = @transform_8, window_bounds = array<i64: 1, 128>}, {transform_indices = @transform_9, window_bounds = array<i64: 16, 128>}]} {
    %c0 = arith.constant 0 : index
    %c0_0 = arith.constant 0 : index
    %0 = vector.load %arg1[%c0, %c0_0] : memref<16x128xf32, #tpu.memory_space<vmem>>, vector<16x128xf32>
    %1 = arith.truncf %0 : vector<16x128xf32> to vector<16x128xbf16>
    %c0_1 = arith.constant 0 : index
    %c0_2 = arith.constant 0 : index
    %2 = vector.load %arg2[%c0_1, %c0_2] : memref<128x128xbf16, #tpu.memory_space<vmem>>, vector<128x128xbf16>
    %cst = arith.constant dense<0.000000e+00> : vector<16x128xf32>
    %3 = tpu.matmul %1, %2, %cst {dimension_numbers = #tpu.dot_dimension_numbers<[1], [0], [0], [1], [0, 0, 1, 1], [], []>} : vector<16x128xbf16>, vector<128x128xbf16>, vector<16x128xf32> -> vector<16x128xf32>
    %c0_3 = arith.constant 0 : index
    %c0_4 = arith.constant 0 : index
    %4 = vector.load %arg3[%c0_3, %c0_4] : memref<1x128xf32, #tpu.memory_space<vmem>>, vector<1x128xf32>
    %5 = vector.broadcast %4 : vector<1x128xf32> to vector<16x128xf32>
    %6 = arith.addf %3, %5 : vector<16x128xf32>
    %cst_5 = arith.constant 0.000000e+00 : f32
    %7 = vector.broadcast %cst_5 : f32 to vector<16x128xf32>
    %8 = arith.maximumf %6, %7 : vector<16x128xf32>
    %9 = arith.truncf %8 : vector<16x128xf32> to vector<16x128xbf16>
    %c0_6 = arith.constant 0 : index
    %c0_7 = arith.constant 0 : index
    %10 = vector.load %arg4[%c0_6, %c0_7] : memref<128x128xbf16, #tpu.memory_space<vmem>>, vector<128x128xbf16>
    %cst_8 = arith.constant dense<0.000000e+00> : vector<16x128xf32>
    %11 = tpu.matmul %9, %10, %cst_8 {dimension_numbers = #tpu.dot_dimension_numbers<[1], [0], [0], [1], [0, 0, 1, 1], [], []>} : vector<16x128xbf16>, vector<128x128xbf16>, vector<16x128xf32> -> vector<16x128xf32>
    %c0_9 = arith.constant 0 : index
    %c0_10 = arith.constant 0 : index
    %12 = vector.load %arg5[%c0_9, %c0_10] : memref<1x128xf32, #tpu.memory_space<vmem>>, vector<1x128xf32>
    %13 = vector.broadcast %12 : vector<1x128xf32> to vector<16x128xf32>
    %14 = arith.addf %11, %13 : vector<16x128xf32>
    %cst_11 = arith.constant 0.000000e+00 : f32
    %15 = vector.broadcast %cst_11 : f32 to vector<16x128xf32>
    %16 = arith.maximumf %14, %15 : vector<16x128xf32>
    %17 = arith.truncf %16 : vector<16x128xf32> to vector<16x128xbf16>
    %c0_12 = arith.constant 0 : index
    %c0_13 = arith.constant 0 : index
    %18 = vector.load %arg6[%c0_12, %c0_13] : memref<128x128xbf16, #tpu.memory_space<vmem>>, vector<128x128xbf16>
    %cst_14 = arith.constant dense<0.000000e+00> : vector<16x128xf32>
    %19 = tpu.matmul %17, %18, %cst_14 {dimension_numbers = #tpu.dot_dimension_numbers<[1], [0], [0], [1], [0, 0, 1, 1], [], []>} : vector<16x128xbf16>, vector<128x128xbf16>, vector<16x128xf32> -> vector<16x128xf32>
    %c0_15 = arith.constant 0 : index
    %c0_16 = arith.constant 0 : index
    %20 = vector.load %arg7[%c0_15, %c0_16] : memref<1x128xf32, #tpu.memory_space<vmem>>, vector<1x128xf32>
    %21 = vector.broadcast %20 : vector<1x128xf32> to vector<16x128xf32>
    %22 = arith.addf %19, %21 : vector<16x128xf32>
    %cst_17 = arith.constant 0.000000e+00 : f32
    %23 = vector.broadcast %cst_17 : f32 to vector<16x128xf32>
    %24 = arith.maximumf %22, %23 : vector<16x128xf32>
    %25 = arith.truncf %24 : vector<16x128xf32> to vector<16x128xbf16>
    %c0_18 = arith.constant 0 : index
    %c0_19 = arith.constant 0 : index
    %26 = vector.load %arg8[%c0_18, %c0_19] : memref<128x128xbf16, #tpu.memory_space<vmem>>, vector<128x128xbf16>
    %cst_20 = arith.constant dense<0.000000e+00> : vector<16x128xf32>
    %27 = tpu.matmul %25, %26, %cst_20 {dimension_numbers = #tpu.dot_dimension_numbers<[1], [0], [0], [1], [0, 0, 1, 1], [], []>} : vector<16x128xbf16>, vector<128x128xbf16>, vector<16x128xf32> -> vector<16x128xf32>
    %c0_21 = arith.constant 0 : index
    %c0_22 = arith.constant 0 : index
    %28 = vector.load %arg9[%c0_21, %c0_22] : memref<1x128xf32, #tpu.memory_space<vmem>>, vector<1x128xf32>
    %29 = vector.broadcast %28 : vector<1x128xf32> to vector<16x128xf32>
    %30 = arith.addf %27, %29 : vector<16x128xf32>
    %c0_23 = arith.constant 0 : index
    %c0_24 = arith.constant 0 : index
    %31 = vector.load %arg10[%c0_23, %c0_24] : memref<16x128xf32, #tpu.memory_space<vmem>>, vector<16x128xf32>
    tpu.vector_store %arg10[%c0_23, %c0_24], %30 {strides = array<i32>} : memref<16x128xf32, #tpu.memory_space<vmem>>, vector<16x128xf32>,
    return
  }
  func.func @transform_0(%arg0: i32) -> (i32, i32) {
    %c0_i32 = arith.constant 0 : i32
    %c0_i32_0 = arith.constant 0 : i32
    return %arg0, %c0_i32 : i32, i32
  }
  func.func @transform_1(%arg0: i32) -> (i32, i32) {
    %c0_i32 = arith.constant 0 : i32
    %c0_i32_0 = arith.constant 0 : i32
    %c0_i32_1 = arith.constant 0 : i32
    return %c0_i32, %c0_i32_0 : i32, i32
  }
  func.func @transform_2(%arg0: i32) -> (i32, i32) {
    %c0_i32 = arith.constant 0 : i32
    %c0_i32_0 = arith.constant 0 : i32
    %c0_i32_1 = arith.constant 0 : i32
    return %c0_i32, %c0_i32_0 : i32, i32
  }
  func.func @transform_3(%arg0: i32) -> (i32, i32) {
    %c0_i32 = arith.constant 0 : i32
    %c0_i32_0 = arith.constant 0 : i32
    %c0_i32_1 = arith.constant 0 : i32
    return %c0_i32, %c0_i32_0 : i32, i32
  }
  func.func @transform_4(%arg0: i32) -> (i32, i32) {
    %c0_i32 = arith.constant 0 : i32
    %c0_i32_0 = arith.constant 0 : i32
    %c0_i32_1 = arith.constant 0 : i32
    return %c0_i32, %c0_i32_0 : i32, i32
  }
  func.func @transform_5(%arg0: i32) -> (i32, i32) {
    %c0_i32 = arith.constant 0 : i32
    %c0_i32_0 = arith.constant 0 : i32
    %c0_i32_1 = arith.constant 0 : i32
    return %c0_i32, %c0_i32_0 : i32, i32
  }
  func.func @transform_6(%arg0: i32) -> (i32, i32) {
    %c0_i32 = arith.constant 0 : i32
    %c0_i32_0 = arith.constant 0 : i32
    %c0_i32_1 = arith.constant 0 : i32
    return %c0_i32, %c0_i32_0 : i32, i32
  }
  func.func @transform_7(%arg0: i32) -> (i32, i32) {
    %c0_i32 = arith.constant 0 : i32
    %c0_i32_0 = arith.constant 0 : i32
    %c0_i32_1 = arith.constant 0 : i32
    return %c0_i32, %c0_i32_0 : i32, i32
  }
  func.func @transform_8(%arg0: i32) -> (i32, i32) {
    %c0_i32 = arith.constant 0 : i32
    %c0_i32_0 = arith.constant 0 : i32
    %c0_i32_1 = arith.constant 0 : i32
    return %c0_i32, %c0_i32_0 : i32, i32
  }
  func.func @transform_9(%arg0: i32) -> (i32, i32) {
    %c0_i32 = arith.constant 0 : i32
    %c0_i32_0 = arith.constant 0 : i32
    return %arg0, %c0_i32 : i32, i32
  }
}

</mosaic_0001>

<bundles_post_ra>
// kernel: tpu_custom_call.1
= control target key start
LH: loop header
LB: loop body
LE: loop exit
PB: predicated region body
PF: predicated region fallthrough
CT: control target
= control target key end

     0   :  { %14 = vsyncpa [#allocation3], 0  ;;  %s1123_s0 = inlined_call_operand.hbm [shape: f32[16,128], index: 0, kind: input, shape index: {}]   ;;  %s1124_s1 = inlined_call_operand.hbm [shape: bf16[128,128], index: 1, kind: input, shape index: {}]   ;;  %s1125_s2 = inlined_call_operand.vmem [shape: f32[1,128], index: 2, kind: input, shape index: {}]   ;;  %s1126_s3 = inlined_call_operand.hbm [shape: bf16[128,128], index: 3, kind: input, shape index: {}]   ;;  %s1127_s4 = inlined_call_operand.vmem [shape: f32[1,128], index: 4, kind: input, shape index: {}]   ;;  %s1128_s5 = inlined_call_operand.hbm [shape: bf16[128,128], index: 5, kind: input, shape index: {}]   ;;  %s1129_s6 = inlined_call_operand.vmem [shape: f32[1,128], index: 6, kind: input, shape index: {}]   ;;  %s1130_s7 = inlined_call_operand.hbm [shape: bf16[128,128], index: 7, kind: input, shape index: {}]   ;;  %s1131_s8 = inlined_call_operand.vmem [shape: f32[1,128], index: 8, kind: input, shape index: {}]   ;;  %s1132_s9 = inlined_call_operand.hbm [shape: f32[16,128], index: 9, kind: output, shape index: {}]  }
   0x1   :  { %15 = vsyncpa [#allocation6], 0 }
   0x2   :  { %16 = vsyncpa [#allocation9], 0 }
   0x3   :  { %17 = vsyncpa [#allocation4], 0  ;;  %s919_s30 = smov [#allocation5]   ;;  %s779_s13 = scalar_lea.hbm %s1124_s1, 1024 }
   0x4   :  { %s35_s10 = sshll.u32 %s919_s30, 4  ;;  %p780_p0 = scmp.ne.s32.totalorder %s1124_s1, %s779_s13  ;;  %s36_s10 = int_to_ptr.vmem [resolvable:$true] %s35_s10 }
   0x5   :  { %p783_p1 = scmp.lt.u32.totalorder %s779_s13, %s1124_s1 }
   0x7   :  { %p785_p2 = pnand %p783_p1, %p780_p0 }
   0x9   :  { %788 = shalt.err (!%p785_p2)
}
   0xa   :  { %s789_s18 = scalar_lea.vmem %s36_s10, 1024  ;;  %p794_p4 = scmp.lt.s32.totalorder %s36_s10, %s36_s10 }
   0xb   :  { %p790_p3 = scmp.ne.s32.totalorder %s36_s10, %s789_s18  ;;  %p795_p5 = scmp.lt.s32.totalorder %s789_s18, %s789_s18 }
   0xd   :  { %p796_p6 = por %p795_p5, %p794_p4 }
   0xf   :  { %p797_p7 = pnand %p796_p6, %p790_p3 }
  0x11   :  { %800 = shalt.err (!%p797_p7)
}
  0x12   :  { %s920_s19 = smov 64   ;;  %s921_s20 = smov 4  }
  0x13   :  { %41 = dma.hbm_to_vmem [thread:$0]  %s1124_s1, 1024, %s36_s10, [#allocation6], %s920_s19, %s920_s19, %s921_s20  }
  0x14   :  { %s922_s23 = smov [#allocation8]   ;;  %s923_s25 = smov [#allocation2]  }
  0x15   :  { %s63_s24 = sshll.u32 %s922_s23, 4  ;;  %s23_s26 = sshll.u32 %s923_s25, 4  ;;  %s64_s24 = int_to_ptr.vmem [resolvable:$true] %s63_s24  ;;  %s24_s26 = int_to_ptr.vmem [resolvable:$true] %s23_s26 }
  0x16   :  { %s801_s29 = scalar_lea.hbm %s1128_s5, 1024 }
  0x17   :  { %p802_p8 = scmp.ne.s32.totalorder %s1128_s5, %s801_s29  ;;  %p805_p9 = scmp.lt.u32.totalorder %s801_s29, %s1128_s5 }
  0x19   :  { %p807_p10 = pnand %p805_p9, %p802_p8 }
  0x1b   :  { %810 = shalt.err (!%p807_p10)
}
  0x1c   :  { %s811_s1 = scalar_lea.vmem %s64_s24, 1024  ;;  %p816_p12 = scmp.lt.s32.totalorder %s64_s24, %s64_s24 }
  0x1d   :  { %p812_p11 = scmp.ne.s32.totalorder %s64_s24, %s811_s1  ;;  %p817_p13 = scmp.lt.s32.totalorder %s811_s1, %s811_s1 }
  0x1f   :  { %p818_p0 = por %p817_p13, %p816_p12 }
  0x21   :  { %p819_p1 = pnand %p818_p0, %p812_p11 }
  0x23   :  { %822 = shalt.err (!%p819_p1)
}
  0x24   :  { %69 = dma.hbm_to_vmem [thread:$0]  %s1128_s5, 1024, %s64_s24, [#allocation9], %s920_s19, %s920_s19, %s921_s20  }
  0x25   :  { %s823_s17 = scalar_lea.hbm %s1123_s0, 256 }
  0x26   :  { %p824_p2 = scmp.ne.s32.totalorder %s1123_s0, %s823_s17  ;;  %p827_p3 = scmp.lt.u32.totalorder %s823_s17, %s1123_s0 }
  0x28   :  { %p829_p4 = pnand %p827_p3, %p824_p2 }
  0x2a   :  { %832 = shalt.err (!%p829_p4)
}
  0x2b   :  { %s833_s25 = scalar_lea.vmem %s24_s26, 256  ;;  %p838_p6 = scmp.lt.s32.totalorder %s24_s26, %s24_s26 }
  0x2c   :  { %p834_p5 = scmp.ne.s32.totalorder %s24_s26, %s833_s25  ;;  %p839_p7 = scmp.lt.s32.totalorder %s833_s25, %s833_s25 }
  0x2e   :  { %p840_p8 = por %p839_p7, %p838_p6 }
  0x30   :  { %p841_p9 = pnand %p840_p8, %p834_p5 }
  0x32   :  { %844 = shalt.err (!%p841_p9)
}
  0x33   :  { %s924_s5 = smov 128   ;;  %s925_s24 = smov 8  }
  0x34   :  { %29 = dma.hbm_to_vmem [thread:$0]  %s1123_s0, 256, %s24_s26, [#allocation3], %s924_s5, %s924_s5, %s925_s24  }
  0x35   :  { %s926_s29 = smov [#allocation7]   ;;  %s927_s11 = smov [#allocation10]  }
  0x36   :  { %s49_s30 = sshll.u32 %s926_s29, 4  ;;  %s77_s12 = sshll.u32 %s927_s11, 4  ;;  %s50_s30 = int_to_ptr.vmem [resolvable:$true] %s49_s30  ;;  %s78_s12 = int_to_ptr.vmem [resolvable:$true] %s77_s12 }
  0x37   :  { %s845_s10 = scalar_lea.hbm %s1126_s3, 1024 }
  0x38   :  { %p846_p10 = scmp.ne.s32.totalorder %s1126_s3, %s845_s10  ;;  %p849_p11 = scmp.lt.u32.totalorder %s845_s10, %s1126_s3 }
  0x3a   :  { %p851_p12 = pnand %p849_p11, %p846_p10 }
  0x3c   :  { %854 = shalt.err (!%p851_p12)
}
  0x3d   :  { %s855_s0 = scalar_lea.vmem %s50_s30, 1024  ;;  %p860_p0 = scmp.lt.s32.totalorder %s50_s30, %s50_s30 }
  0x3e   :  { %p856_p13 = scmp.ne.s32.totalorder %s50_s30, %s855_s0  ;;  %p861_p1 = scmp.lt.s32.totalorder %s855_s0, %s855_s0 }
  0x40   :  { %p862_p2 = por %p861_p1, %p860_p0 }
  0x42   :  { %p863_p3 = pnand %p862_p2, %p856_p13 }
  0x44   :  { %866 = shalt.err (!%p863_p3)
}
  0x45   :  { %55 = dma.hbm_to_vmem [thread:$0]  %s1126_s3, 1024, %s50_s30, [#allocation6], %s920_s19, %s920_s19, %s921_s20  }
  0x46   :  { %s867_s23 = scalar_lea.hbm %s1130_s7, 1024 }
  0x47   :  { %p868_p4 = scmp.ne.s32.totalorder %s1130_s7, %s867_s23  ;;  %p871_p5 = scmp.lt.u32.totalorder %s867_s23, %s1130_s7 }
  0x49   :  { %p873_p6 = pnand %p871_p5, %p868_p4 }
  0x4b   :  { %876 = shalt.err (!%p873_p6)
}
  0x4c   :  { %s877_s11 = scalar_lea.vmem %s78_s12, 1024  ;;  %p882_p8 = scmp.lt.s32.totalorder %s78_s12, %s78_s12 }
  0x4d   :  { %p878_p7 = scmp.ne.s32.totalorder %s78_s12, %s877_s11  ;;  %p883_p9 = scmp.lt.s32.totalorder %s877_s11, %s877_s11 }
  0x4f   :  { %p884_p10 = por %p883_p9, %p882_p8 }
  0x51   :  { %p885_p11 = pnand %p884_p10, %p878_p7 }
  0x53   :  { %888 = shalt.err (!%p885_p11)
}
  0x54   :  { %83 = dma.hbm_to_vmem [thread:$0]  %s1130_s7, 1024, %s78_s12, [#allocation9], %s920_s19, %s920_s19, %s921_s20  }
  0x55   :  { %911 = dma.done.wait [#allocation3], 256  }
  0x56   :  { %912 = vsyncadd [#allocation3], 4294967040 }
  0x57   :  { %913 = dma.done.wait [#allocation6], 2048  }
  0x58   :  { %914 = vsyncadd [#allocation6], 4294965248 }
  0x59   :  { %915 = dma.done.wait [#allocation9], 2048  }
  0x5a   :  { %916 = vsyncadd [#allocation9], 4294965248  ;;  %v928_v0 = vmov 0.0   ;;  %vm929_vm0 = vmmov 0   ;;  %v747_v1 = vld [vmem:[#allocation5] sm:$0xff]   ;;  %v748_v2 = vld [vmem:[#allocation5 + $0x8] sm:$0xff]  }
  0x5b   :  { %655 = vmatprep.subr.bf16.mxu0 %v928_v0  ;;  %671 = vmatprep.mubr.msk.bf16.mxu0 %vm929_vm0, %v928_v0  ;;  %v749_v3 = vld [vmem:[#allocation5 + $0x10] sm:$0xff]   ;;  %v755_v4 = vld [vmem:[#allocation7] sm:$0xff]   ;;  %v750_v5 = vld [vmem:[#allocation5 + $0x18] sm:$0xff]   ;;  %s930_s10 = smov [#allocation11]  }
  0x5c   :  { %675 = vmatprep.subr.bf16.mxu1 %v928_v0  ;;  %691 = vmatprep.mubr.msk.bf16.mxu1 %vm929_vm0, %v928_v0  ;;  %v756_v6 = vld [vmem:[#allocation7 + $0x8] sm:$0xff]   ;;  %v751_v7 = vld [vmem:[#allocation5 + $0x20] sm:$0xff]   ;;  %v757_v8 = vld [vmem:[#allocation7 + $0x10] sm:$0xff]   ;;  %s569_s14 = sshll.u32 %s930_s10, 4  ;;  %s570_s14 = int_to_ptr.vmem [resolvable:$true] %s569_s14 }
  0x5d   :  { %656 = vmatpush3.bf16.msra.mxu0 %v747_v1  ;;  %676 = vmatpush3.bf16.msra.mxu1 %v755_v4  ;;  %v752_v9 = vld [vmem:[#allocation5 + $0x28] sm:$0xff]   ;;  %v758_v10 = vld [vmem:[#allocation7 + $0x18] sm:$0xff]   ;;  %v753_v11 = vld [vmem:[#allocation5 + $0x30] sm:$0xff]   ;;  %p894_p13 = scmp.lt.s32.totalorder %s570_s14, %s570_s14 }
  0x5e   :  { %657 = vmatprep.subr.bf16.mxu0 %v928_v0  ;;  %677 = vmatprep.subr.bf16.mxu1 %v928_v0  ;;  %v759_v12 = vld [vmem:[#allocation7 + $0x20] sm:$0xff]   ;;  %v754_v13 = vld [vmem:[#allocation5 + $0x38] sm:$0xff]   ;;  %v102_v14 = vld [vmem:[#allocation2] sm:$0xff] }
  0x5f   :  { %v103_v15 = vld [vmem:[#allocation2 + $0x8] sm:$0xff]  ;;  %v760_v16 = vld [vmem:[#allocation7 + $0x28] sm:$0xff]   ;;  %v761_v18 = vld [vmem:[#allocation7 + $0x30] sm:$0xff]  }
  0x60   :  { %v104_v17 = vpack.c.bf16 %v103_v15, %v102_v14  ;;  %v762_v19 = vld [vmem:[#allocation7 + $0x38] sm:$0xff]   ;;  %v763_v20 = vld [vmem:[#allocation8] sm:$0xff]   ;;  %v764_v21 = vld [vmem:[#allocation8 + $0x8] sm:$0xff]  }
  0x61   :  { %658 = vmatpush3.bf16.msra.mxu0 %v748_v2  ;;  %678 = vmatpush3.bf16.msra.mxu1 %v756_v6  ;;  %v765_v22 = vld [vmem:[#allocation8 + $0x10] sm:$0xff]   ;;  %v766_v23 = vld [vmem:[#allocation8 + $0x18] sm:$0xff]   ;;  %v767_v24 = vld [vmem:[#allocation8 + $0x20] sm:$0xff]  }
  0x62   :  { %659 = vmatprep.subr.bf16.mxu0 %v928_v0  ;;  %679 = vmatprep.subr.bf16.mxu1 %v928_v0  ;;  %v768_v25 = vld [vmem:[#allocation8 + $0x28] sm:$0xff]   ;;  %v583_v26 = vld [vmem:[%s1125_s2] ss:$0 sm:$0xff]  ;;  %v770_v37 = vld [vmem:[#allocation8 + $0x38] sm:$0xff]  }
  0x63   :  { %v769_v36 = vld [vmem:[#allocation8 + $0x30] sm:$0xff]   ;;  %v771_v38 = vld [vmem:[#allocation10] sm:$0xff]   ;;  %v772_v39 = vld [vmem:[#allocation10 + $0x8] sm:$0xff]  }
  0x64   :  { %v773_v40 = vld [vmem:[#allocation10 + $0x10] sm:$0xff]   ;;  %v774_v41 = vld [vmem:[#allocation10 + $0x18] sm:$0xff]   ;;  %v775_v42 = vld [vmem:[#allocation10 + $0x20] sm:$0xff]  }
  0x65   :  { %660 = vmatpush3.bf16.msra.mxu0 %v749_v3  ;;  %680 = vmatpush3.bf16.msra.mxu1 %v757_v8  ;;  %v776_v43 = vld [vmem:[#allocation10 + $0x28] sm:$0xff]   ;;  %v592_v44 = vld [vmem:[%s1127_s4] ss:$0 sm:$0xff]  ;;  %v778_v55 = vld [vmem:[#allocation10 + $0x38] sm:$0xff]  }
  0x66   :  { %661 = vmatprep.subr.bf16.mxu0 %v928_v0  ;;  %681 = vmatprep.subr.bf16.mxu1 %v928_v0  ;;  %v777_v54 = vld [vmem:[#allocation10 + $0x30] sm:$0xff]  }
  0x67   :  { %v601_v56 = vld [vmem:[%s1129_s6] ss:$0 sm:$0xff]  ;;  %s889_s6 = scalar_lea.vmem %s570_s14, 256 }
  0x68   :  { %p890_p12 = scmp.ne.s32.totalorder %s570_s14, %s889_s6  ;;  %p895_p0 = scmp.lt.s32.totalorder %s889_s6, %s889_s6 }
  0x69   :  { %662 = vmatpush3.bf16.msra.mxu0 %v750_v5  ;;  %682 = vmatpush3.bf16.msra.mxu1 %v758_v10 }
  0x6a   :  { %663 = vmatprep.subr.bf16.mxu0 %v928_v0  ;;  %683 = vmatprep.subr.bf16.mxu1 %v928_v0  ;;  %p896_p1 = por %p895_p0, %p894_p13 }
  0x6c   :  { %p897_p2 = pnand %p896_p1, %p890_p12 }
  0x6d   :  { %664 = vmatpush3.bf16.msra.mxu0 %v751_v7  ;;  %684 = vmatpush3.bf16.msra.mxu1 %v759_v12 }
  0x6e   :  { %665 = vmatprep.subr.bf16.mxu0 %v928_v0  ;;  %685 = vmatprep.subr.bf16.mxu1 %v928_v0 }
  0x71   :  { %666 = vmatpush3.bf16.msra.mxu0 %v752_v9  ;;  %686 = vmatpush3.bf16.msra.mxu1 %v760_v16 }
  0x72   :  { %667 = vmatprep.subr.bf16.mxu0 %v928_v0  ;;  %687 = vmatprep.subr.bf16.mxu1 %v928_v0 }
  0x75   :  { %668 = vmatpush3.bf16.msra.mxu0 %v753_v11  ;;  %688 = vmatpush3.bf16.msra.mxu1 %v761_v18 }
  0x76   :  { %669 = vmatprep.subr.bf16.mxu0 %v928_v0  ;;  %689 = vmatprep.subr.bf16.mxu1 %v928_v0 }
  0x79   :  { %670 = vmatpush3.bf16.msra.mxu0 %v754_v13  ;;  %690 = vmatpush3.bf16.msra.mxu1 %v762_v19 }
  0x7a   :  { %695 = vmatprep.subr.bf16.mxu0 %v928_v0  ;;  %715 = vmatprep.subr.bf16.mxu1 %v928_v0 }
  0x7c   :  { %672 = vmatmul.mubr.bf16.vlgmr.msra.gmra.mrb[0].mxu0 %v104_v17 }
  0x7d   :  { %711 = vmatprep.mubr.msk.bf16.mxu0 %vm929_vm0, %v928_v0  ;;  %696 = vmatpush3.bf16.msra.mxu0 %v763_v20 }
  0x7e   :  { %697 = vmatprep.subr.bf16.mxu0 %v928_v0 }
  0x81   :  { %698 = vmatpush3.bf16.msra.mxu0 %v764_v21 }
  0x82   :  { %699 = vmatprep.subr.bf16.mxu0 %v928_v0 }
  0x85   :  { %700 = vmatpush3.bf16.msra.mxu0 %v765_v22 }
  0x86   :  { %701 = vmatprep.subr.bf16.mxu0 %v928_v0 }
  0x89   :  { %702 = vmatpush3.bf16.msra.mxu0 %v766_v23 }
  0x8a   :  { %703 = vmatprep.subr.bf16.mxu0 %v928_v0 }
  0x8d   :  { %704 = vmatpush3.bf16.msra.mxu0 %v767_v24 }
  0x8e   :  { %705 = vmatprep.subr.bf16.mxu0 %v928_v0 }
  0x91   :  { %706 = vmatpush3.bf16.msra.mxu0 %v768_v25 }
  0x92   :  { %707 = vmatprep.subr.bf16.mxu0 %v928_v0 }
  0x95   :  { %708 = vmatpush3.bf16.msra.mxu0 %v769_v36 }
  0x96   :  { %709 = vmatprep.subr.bf16.mxu0 %v928_v0 }
  0x99   :  { %710 = vmatpush3.bf16.msra.mxu0 %v770_v37 }
 0x14f   :  { %v210_v27 = vpop.f32.mrb[0].mxu0 }
 0x150   :  { %v211_v28 = vadd.f32 %v583_v26, %v210_v27  ;;  %v673_v29 = vpop.f32.mrb[1].mxu0 }
 0x151   :  { %v213_v30 = vpop.f32.mrb[2].mxu0 }
 0x152   :  { %v214_v31 = vadd.f32 %v583_v26, %v213_v30  ;;  %v674_v32 = vpop.f32.mrb[3].mxu0  ;;  %v217_v33 = vmax.f32 %v211_v28, 0.0 }
 0x154   :  { %v218_v34 = vmax.f32 %v214_v31, 0.0 }
 0x156   :  { %v219_v35 = vpack.c.bf16 %v218_v34, %v217_v33 }
 0x158   :  { %692 = vmatmul.mubr.bf16.vlgmr.msra.gmra.mrb[0].mxu1 %v219_v35 }
 0x159   :  { %731 = vmatprep.mubr.msk.bf16.mxu1 %vm929_vm0, %v928_v0  ;;  %716 = vmatpush3.bf16.msra.mxu1 %v771_v38 }
 0x15a   :  { %717 = vmatprep.subr.bf16.mxu1 %v928_v0 }
 0x15d   :  { %718 = vmatpush3.bf16.msra.mxu1 %v772_v39 }
 0x15e   :  { %719 = vmatprep.subr.bf16.mxu1 %v928_v0 }
 0x161   :  { %720 = vmatpush3.bf16.msra.mxu1 %v773_v40 }
 0x162   :  { %721 = vmatprep.subr.bf16.mxu1 %v928_v0 }
 0x165   :  { %722 = vmatpush3.bf16.msra.mxu1 %v774_v41 }
 0x166   :  { %723 = vmatprep.subr.bf16.mxu1 %v928_v0 }
 0x169   :  { %724 = vmatpush3.bf16.msra.mxu1 %v775_v42 }
 0x16a   :  { %725 = vmatprep.subr.bf16.mxu1 %v928_v0 }
 0x16d   :  { %726 = vmatpush3.bf16.msra.mxu1 %v776_v43 }
 0x16e   :  { %727 = vmatprep.subr.bf16.mxu1 %v928_v0 }
 0x171   :  { %728 = vmatpush3.bf16.msra.mxu1 %v777_v54 }
 0x172   :  { %729 = vmatprep.subr.bf16.mxu1 %v928_v0  ;;  %v610_v0 = vld [vmem:[%s1131_s8] ss:$0 sm:$0xff] }
 0x175   :  { %730 = vmatpush3.bf16.msra.mxu1 %v778_v55 }
 0x22b   :  { %v325_v45 = vpop.f32.mrb[0].mxu1 }
 0x22c   :  { %v326_v46 = vadd.f32 %v592_v44, %v325_v45  ;;  %v693_v47 = vpop.f32.mrb[1].mxu1 }
 0x22d   :  { %v328_v48 = vpop.f32.mrb[2].mxu1 }
 0x22e   :  { %v329_v49 = vadd.f32 %v592_v44, %v328_v48  ;;  %v694_v50 = vpop.f32.mrb[3].mxu1  ;;  %v332_v51 = vmax.f32 %v326_v46, 0.0 }
 0x230   :  { %v333_v52 = vmax.f32 %v329_v49, 0.0 }
 0x232   :  { %v334_v53 = vpack.c.bf16 %v333_v52, %v332_v51 }
 0x234   :  { %712 = vmatmul.mubr.bf16.vlgmr.msra.gmra.mrb[4].mxu0 %v334_v53 }
 0x307   :  { %v440_v57 = vpop.f32.mrb[4].mxu0 }
 0x308   :  { %v441_v58 = vadd.f32 %v601_v56, %v440_v57  ;;  %v713_v59 = vpop.f32.mrb[5].mxu0 }
 0x309   :  { %v443_v60 = vpop.f32.mrb[6].mxu0 }
 0x30a   :  { %v444_v61 = vadd.f32 %v601_v56, %v443_v60  ;;  %v714_v62 = vpop.f32.mrb[7].mxu0  ;;  %v447_v63 = vmax.f32 %v441_v58, 0.0 }
 0x30c   :  { %v448_v1 = vmax.f32 %v444_v61, 0.0 }
 0x30e   :  { %v449_v2 = vpack.c.bf16 %v448_v1, %v447_v63 }
 0x310   :  { %732 = vmatmul.mubr.bf16.vlgmr.msra.gmra.mrb[4].mxu1 %v449_v2 }
 0x3e3   :  { %v555_v3 = vpop.f32.mrb[4].mxu1 }
 0x3e4   :  { %v556_v4 = vadd.f32 %v610_v0, %v555_v3  ;;  %v733_v5 = vpop.f32.mrb[5].mxu1 }
 0x3e5   :  { %v558_v6 = vpop.f32.mrb[6].mxu1 }
 0x3e6   :  { %562 = vst [vmem:[#allocation11] sm:$0xff] %v556_v4  ;;  %v559_v7 = vadd.f32 %v610_v0, %v558_v6  ;;  %v734_v8 = vpop.f32.mrb[7].mxu1 }
 0x3e8   :  { %563 = vst [vmem:[#allocation11 + $0x8] sm:$0xff] %v559_v7 }
 0x3e9   :  { %900 = shalt.err (!%p897_p2)
}
 0x3ea   :  { %s901_s16 = scalar_lea.hbm %s1132_s9, 256 }
 0x3eb   :  { %p902_p3 = scmp.ne.s32.totalorder %s1132_s9, %s901_s16  ;;  %p905_p4 = scmp.lt.u32.totalorder %s901_s16, %s1132_s9 }
 0x3ed   :  { %p907_p5 = pnand %p905_p4, %p902_p3 }
 0x3ef   :  { %910 = shalt.err (!%p907_p5)
}
 0x3f0   :  { %575 = dma.vmem_to_hbm [thread:$0]  %s570_s14, 256, %s1132_s9, [#allocation4], %s924_s5, %s924_s5, %s925_s24  }
 0x3f1   :  { %917 = dma.done.wait [#allocation4], 256  }
 0x3f2   :  { %918 = vsyncadd [#allocation4], 4294967040 }
 0x3f3   :  { %579 = vsyncpa [#allocation3], 1 }
 0x3f4   :  { %580 = vsyncpa [#allocation6], 1 }
 0x3f5   :  { %581 = vsyncpa [#allocation9], 1 }
 0x3f6   :  { %582 = vsyncpa [#allocation4], 1 }

</bundles_post_ra>
